<compile_context>
chip_gen: v6e
topology: v6e:2x2x1
jax: 0.10.0
libtpu: 0.0.40
codegen_flags: <defaults>
</compile_context>

<pallas_src>
import functools
import math

import jax
import jax.numpy as jnp
from jax.experimental import pallas as pl
from jax.experimental.pallas import tpu as pltpu


# ----------------------------- chip-aware config ----------------------------

def _vmem_capacity_bytes():
    try:
        info = pltpu.get_tpu_info()
        cap = getattr(info, "vmem_capacity_bytes", None)
        if cap:
            return int(cap)
    except Exception:
        pass
    return 128 << 20


_VMEM_CAP = _vmem_capacity_bytes()
# v5e/v6e (128 MiB VMEM): bigger row tiles amortize per-grid-step overhead.
# v7x (64 MiB): keep tiles modest so double-buffered FFN weights still fit.
_ROW_TILE = 512 if _VMEM_CAP >= (100 << 20) else 256
_VMEM_LIMIT = int(min((3 * _VMEM_CAP) // 4, 96 << 20))

_PARALLEL = pltpu.CompilerParams(dimension_semantics=("parallel",),
                                 vmem_limit_bytes=_VMEM_LIMIT)


def _round_up(x, m):
    return ((x + m - 1) // m) * m


def _row_tiling(n, target):
    """Row tile (multiple of 8) and padded row count (multiple of the tile)."""
    tn = min(_round_up(target, 8), _round_up(n, 8))
    return tn, _round_up(n, tn)


def _head_group(num_heads, dh):
    """Heads per group so a group's lane width is a multiple of 128 when possible."""
    if (dh * num_heads) % 128 != 0:
        return num_heads                      # small model: whole D fits in one vreg row
    g = max(1, 128 // dh)
    while num_heads % g != 0:
        g -= 1
    return g


# ----------------------------- Pallas kernels ------------------------------

def attn_block_kernel(x_ref, g_ref, b_ref, wqkv_ref, bqkv_ref, wo_ref, bo_ref,
                      bias_ref, o_ref, attn_ref, *, num_heads, eps):
    """Fused LN1 + QKV + causal MHA + out-proj + residual for one batch row.

    x_ref/o_ref: (1, S, D) f32 residual stream (aliased).  wqkv: (D, 3D) bf16
    with 1/sqrt(Dh) folded into the first D columns.  bias: (S, S) f32 additive
    causal mask.  attn_ref: (S, D) f32 VMEM scratch for the merged head outputs.
    """
    S, D = x_ref.shape[1], x_ref.shape[2]
    dh = D // num_heads
    hg = _head_group(num_heads, dh)

    x = x_ref[0, :, :].astype(jnp.float32)                      # (S, D)
    mu = jnp.mean(x, axis=-1, keepdims=True)
    var = jnp.mean(jnp.square(x - mu), axis=-1, keepdims=True)
    y = (x - mu) * jax.lax.rsqrt(var + eps) * g_ref[...] + b_ref[...]

    # One wide MXU pass for Q, K and V (N = 3D).
    yb = y.astype(wqkv_ref.dtype)
    qkv = (jnp.dot(yb, wqkv_ref[...], preferred_element_type=jnp.float32)
           + bqkv_ref[...])                                      # (S, 3D) f32
    q = qkv[:, :D].astype(wqkv_ref.dtype)
    k = qkv[:, D:2 * D].astype(wqkv_ref.dtype)
    v = qkv[:, 2 * D:].astype(wqkv_ref.dtype)
    bias = bias_ref[...]                                         # (S, S) f32

    for h0 in range(0, num_heads, hg):                           # static head-group loop
        outs = []
        for h in range(h0, h0 + hg):
            lo, hi = h * dh, (h + 1) * dh
            qh, kh, vh = q[:, lo:hi], k[:, lo:hi], v[:, lo:hi]   # (S, Dh) bf16
            # q @ k^T without materializing k.T; scale already folded into Wq.
            s = jax.lax.dot_general(qh, kh, (((1,), (1,)), ((), ())),
                                    preferred_element_type=jnp.float32) + bias
            m = jnp.max(s, axis=-1, keepdims=True)
            p = jnp.exp(s - m)
            inv = pl.reciprocal(jnp.sum(p, axis=-1, keepdims=True), approx=True)
            ph = (p * inv).astype(vh.dtype)
            outs.append(jnp.dot(ph, vh, preferred_element_type=jnp.float32))
        # Lane-dense group store (group width multiple of 128 when D allows).
        attn_ref[:, h0 * dh:(h0 + hg) * dh] = jnp.concatenate(outs, axis=-1)

    a = attn_ref[...].astype(wo_ref.dtype)
    yo = jnp.dot(a, wo_ref[...], preferred_element_type=jnp.float32) + bo_ref[...]
    o_ref[0, :, :] = (x + yo).astype(o_ref.dtype)


def ln_ffn_residual_kernel(x_ref, g_ref, b_ref, w1_ref, b1_ref, w2_ref, b2_ref,
                           o_ref, *, eps):
    # x_new = x + W2 * QuickGELU(W1 * LN2(x) + b1) + b2, one pass over the row tile.
    x = x_ref[...].astype(jnp.float32)
    mu = jnp.mean(x, axis=-1, keepdims=True)
    var = jnp.mean(jnp.square(x - mu), axis=-1, keepdims=True)
    y = (x - mu) * jax.lax.rsqrt(var + eps) * g_ref[...] + b_ref[...]
    h = jnp.dot(y.astype(w1_ref.dtype), w1_ref[...],
                preferred_element_type=jnp.float32) + b1_ref[...]
    h = h * jax.nn.sigmoid(1.702 * h)                            # QuickGELU, f32 on EUP
    m = jnp.dot(h.astype(w2_ref.dtype), w2_ref[...],
                preferred_element_type=jnp.float32) + b2_ref[...]
    o_ref[...] = (x + m).astype(o_ref.dtype)


def ln_proj_kernel(x_ref, g_ref, b_ref, w_ref, o_ref, *, eps):
    # Fused ln_final + text_projection on the gathered EOT rows only (B rows).
    x = x_ref[...].astype(jnp.float32)
    mu = jnp.mean(x, axis=-1, keepdims=True)
    var = jnp.mean(jnp.square(x - mu), axis=-1, keepdims=True)
    y = (x - mu) * jax.lax.rsqrt(var + eps) * g_ref[...] + b_ref[...]
    o_ref[...] = jnp.dot(y.astype(w_ref.dtype), w_ref[...],
                         preferred_element_type=jnp.float32).astype(o_ref.dtype)


# ----------------------------- Pallas wrappers ------------------------------

def p_attn_block(x, g, b, wqkv, bqkv, wo, bo, bias, *, num_heads):
    B, S, D = x.shape
    rep = lambda i: (0, 0)
    row = lambda i: (i, 0, 0)
    return pl.pallas_call(
        functools.partial(attn_block_kernel, num_heads=num_heads, eps=1e-5),
        grid=(B,),
        in_specs=[pl.BlockSpec((1, S, D), row),
                  pl.BlockSpec(g.shape, rep), pl.BlockSpec(b.shape, rep),
                  pl.BlockSpec(wqkv.shape, rep), pl.BlockSpec(bqkv.shape, rep),
                  pl.BlockSpec(wo.shape, rep), pl.BlockSpec(bo.shape, rep),
                  pl.BlockSpec(bias.shape, rep)],
        out_specs=pl.BlockSpec((1, S, D), row),
        out_shape=jax.ShapeDtypeStruct((B, S, D), x.dtype),
        scratch_shapes=[pltpu.VMEM((S, D), jnp.float32)],
        input_output_aliases={0: 0},          # residual stream updated in place
        compiler_params=_PARALLEL,
    )(x, g, b, wqkv, bqkv, wo, bo, bias)


def p_ln_ffn_residual(x, g, b, w1, b1, w2, b2, *, row_tile):
    N, D = x.shape
    tn, n_pad = _row_tiling(N, row_tile)
    xp = x if n_pad == N else jnp.pad(x, ((0, n_pad - N), (0, 0)))
    row = lambda i: (i, 0)
    rep = lambda i: (0, 0)
    w_spec = lambda a: pl.BlockSpec(a.shape, rep)
    out = pl.pallas_call(
        functools.partial(ln_ffn_residual_kernel, eps=1e-5),
        grid=(n_pad // tn,),
        in_specs=[pl.BlockSpec((tn, D), row),
                  w_spec(g), w_spec(b),
                  w_spec(w1), w_spec(b1),
                  w_spec(w2), w_spec(b2)],
        out_specs=pl.BlockSpec((tn, D), row),
        out_shape=jax.ShapeDtypeStruct((n_pad, D), x.dtype),
        input_output_aliases={0: 0},          # residual stream updated in place
        compiler_params=_PARALLEL,
    )(xp, g, b, w1, b1, w2, b2)
    return out if n_pad == N else out[:N]


def p_ln_proj(x, g, b, w):
    B, D = x.shape
    E = w.shape[1]
    return pl.pallas_call(
        functools.partial(ln_proj_kernel, eps=1e-5),
        out_shape=jax.ShapeDtypeStruct((B, E), jnp.float32),
    )(x, g, b, w)


# ----------------------------- model forward --------------------------------

def prepare_params(params, num_heads):
    """Fuse / pre-scale / bf16-cast weights once, outside the hot path."""
    D = params["pos_emb"].shape[-1]
    dh = D // num_heads
    scale = 1.0 / math.sqrt(dh)
    f32, bf16 = jnp.float32, jnp.bfloat16
    prep = {
        "pos_emb": params["pos_emb"].astype(f32),
        "lnf_g": params["lnf_g"].reshape(1, D).astype(f32),
        "lnf_b": params["lnf_b"].reshape(1, D).astype(f32),
        "text_projection": params["text_projection"].astype(bf16),
        "layers": [],
    }
    # Fold 1/sqrt(Dh) into the Q columns of the fused (D, 3D) QKV weight/bias.
    col_scale = jnp.concatenate(
        [jnp.full((D,), scale, f32), jnp.ones((2 * D,), f32)])
    for p in params["layers"]:
        prep["layers"].append({
            "ln1_g": p["ln1_g"].reshape(1, D).astype(f32),
            "ln1_b": p["ln1_b"].reshape(1, D).astype(f32),
            "w_qkv": (p["in_proj_w"] * col_scale[None, :]).astype(bf16),
            "b_qkv": (p["in_proj_b"] * col_scale).reshape(1, 3 * D).astype(f32),
            "wo": p["out_proj_w"].astype(bf16),
            "bo": p["out_proj_b"].reshape(1, D).astype(f32),
            "ln2_g": p["ln2_g"].reshape(1, D).astype(f32),
            "ln2_b": p["ln2_b"].reshape(1, D).astype(f32),
            "w1": p["mlp_w1"].astype(bf16),
            "b1": p["mlp_b1"].reshape(1, -1).astype(f32),
            "w2": p["mlp_w2"].astype(bf16),
            "b2": p["mlp_b2"].reshape(1, D).astype(f32),
        })
    return prep


def residual_attention_block(x, p, bias, num_heads):
    B, S, D = x.shape
    x = p_attn_block(x, p["ln1_g"], p["ln1_b"], p["w_qkv"], p["b_qkv"],
                     p["wo"], p["bo"], bias, num_heads=num_heads)
    xf = p_ln_ffn_residual(x.reshape(B * S, D), p["ln2_g"], p["ln2_b"],
                           p["w1"], p["b1"], p["w2"], p["b2"],
                           row_tile=_ROW_TILE)
    return xf.reshape(B, S, D)


def text_encoder_forward(prompts, tokenized_prompts, params, *, num_heads):
    # prompts: (B, S, D) f32; tokenized_prompts: (B, S) int32.
    B, S, D = prompts.shape
    # Positional-embedding add left to XLA fusion (pure elementwise, ~zero compute).
    x = prompts.astype(jnp.float32) + params["pos_emb"][None]
    # Precomputed additive causal mask, replicated into every attention kernel call.
    row = jax.lax.broadcasted_iota(jnp.int32, (S, S), 0)
    col = jax.lax.broadcasted_iota(jnp.int32, (S, S), 1)
    bias = jnp.where(col <= row, 0.0, -1e30).astype(jnp.float32)
    # (torch permute(1,0,2) is a layout no-op here; we stay batch-first)
    for lp in params["layers"]:
        x = residual_attention_block(x, lp, bias, num_heads)
    # EOT-token gather (dynamic per-row index) in plain JAX; LayerNorm is row-wise,
    # so gathering before ln_final is equivalent and skips a full LN pass.
    eot_idx = jnp.argmax(tokenized_prompts, axis=-1)             # (B,)
    pooled = x[jnp.arange(B), eot_idx]                           # (B, D)
    return p_ln_proj(pooled, params["lnf_g"], params["lnf_b"],
                     params["text_projection"])                  # (B, E)


# ----------------------------- pure-JAX reference ----------------------------

def _ref_ln(x, g, b, eps=1e-5):
    mu = jnp.mean(x, axis=-1, keepdims=True)
    var = jnp.mean((x - mu) ** 2, axis=-1, keepdims=True)
    return (x - mu) * jax.lax.rsqrt(var + eps) * g + b


def ref_forward(prompts, tokenized_prompts, params, num_heads):
    B, S, D = prompts.shape
    Dh = D // num_heads
    x = prompts + params["pos_emb"][None]
    mask = jnp.where(jnp.triu(jnp.ones((S, S), bool), 1), -jnp.inf, 0.0)
    for p in params["layers"]:
        h = _ref_ln(x, p["ln1_g"], p["ln1_b"])
        qkv = h @ p["in_proj_w"] + p["in_proj_b"]
        qkv = qkv.reshape(B, S, 3, num_heads, Dh).transpose(2, 0, 3, 1, 4)
        q, k, v = qkv[0], qkv[1], qkv[2]                         # (B, H, S, Dh)
        s = jnp.einsum("bhqd,bhkd->bhqk", q, k) / math.sqrt(Dh) + mask
        a = jax.nn.softmax(s, axis=-1)
        o = jnp.einsum("bhqk,bhkd->bhqd", a, v).transpose(0, 2, 1, 3).reshape(B, S, D)
        x = x + (o @ p["out_proj_w"] + p["out_proj_b"])
        h = _ref_ln(x, p["ln2_g"], p["ln2_b"])
        m = h @ p["mlp_w1"] + p["mlp_b1"]
        m = m * jax.nn.sigmoid(1.702 * m)
        x = x + (m @ p["mlp_w2"] + p["mlp_b2"])
    x = _ref_ln(x, params["lnf_g"], params["lnf_b"])
    pooled = x[jnp.arange(B), jnp.argmax(tokenized_prompts, axis=-1)]
    return pooled @ params["text_projection"]


# ----------------------------- param init -----------------------------------

def init_params(key, *, seq, width, layers, embed_dim):
    ks = iter(jax.random.split(key, 8 + layers * 8))

    def nrm(k, shape, scale=0.02):
        return (scale * jax.random.normal(k, shape)).astype(jnp.float32)

    params = {
        "pos_emb": nrm(next(ks), (seq, width), 0.01),
        "lnf_g": jnp.ones((width,), jnp.float32),
        "lnf_b": jnp.zeros((width,), jnp.float32),
        "text_projection": nrm(next(ks), (width, embed_dim), width ** -0.5),
        "layers": [],
    }
    for _ in range(layers):
        params["layers"].append({
            "ln1_g": jnp.ones((width,), jnp.float32),
            "ln1_b": jnp.zeros((width,), jnp.float32),
            "in_proj_w": nrm(next(ks), (width, 3 * width)),
            "in_proj_b": jnp.zeros((3 * width,), jnp.float32),
            "out_proj_w": nrm(next(ks), (width, width)),
            "out_proj_b": jnp.zeros((width,), jnp.float32),
            "ln2_g": jnp.ones((width,), jnp.float32),
            "ln2_b": jnp.zeros((width,), jnp.float32),
            "mlp_w1": nrm(next(ks), (width, 4 * width)),
            "mlp_b1": jnp.zeros((4 * width,), jnp.float32),
            "mlp_w2": nrm(next(ks), (4 * width, width)),
            "mlp_b2": jnp.zeros((width,), jnp.float32),
        })
    return params


# ----------------------------- main ------------------------------------------

if __name__ == "__main__":
    B, S, D, H, L, E = 2, 8, 32, 4, 2, 32

    key = jax.random.PRNGKey(0)
    k_par, k_prompts, k_tok = jax.random.split(key, 3)

    params = init_params(k_par, seq=S, width=D, layers=L, embed_dim=E)
    prompts = (0.02 * jax.random.normal(k_prompts, (B, S, D))).astype(jnp.float32)
    tokenized_prompts = jax.random.randint(k_tok, (B, S), 0, 1000, dtype=jnp.int32)

    enc_params = prepare_params(params, num_heads=H)
    fwd = jax.jit(functools.partial(text_encoder_forward, num_heads=H))
    out = jax.block_until_ready(fwd(prompts, tokenized_prompts, enc_params))

    ref = jax.block_until_ready(ref_forward(prompts, tokenized_prompts, params, num_heads=H))
    assert out.shape == (B, E), out.shape
    max_diff = float(jnp.max(jnp.abs(out - ref)))
    # bf16 matmul operands (f32 accumulation) -> slightly looser tolerance than pure f32.
    assert jnp.allclose(out, ref, atol=2e-2, rtol=2e-2), f"mismatch: max abs diff {max_diff}"

    print("KERNEL_OK")
</pallas_src>

<mosaic_0001>
module attributes {stable_mosaic.version = 11 : i64} {
  func.func @attn_block_kernel(%arg0: i32, %arg1: memref<1x8x32xf32, #tpu.memory_space<vmem>>, %arg2: memref<1x32xf32, #tpu.memory_space<vmem>>, %arg3: memref<1x32xf32, #tpu.memory_space<vmem>>, %arg4: memref<32x96xbf16, #tpu.memory_space<vmem>>, %arg5: memref<1x96xf32, #tpu.memory_space<vmem>>, %arg6: memref<32x32xbf16, #tpu.memory_space<vmem>>, %arg7: memref<1x32xf32, #tpu.memory_space<vmem>>, %arg8: memref<8x8xf32, #tpu.memory_space<vmem>>, %arg9: memref<1x8x32xf32, #tpu.memory_space<vmem>>, %arg10: memref<8x32xf32, #tpu.memory_space<vmem>>) attributes {dimension_semantics = [#tpu.dimension_semantics<parallel>], iteration_bounds = array<i64: 2>, scalar_prefetch = 0 : i64, scratch_operands = 1 : i64, tpu.core_type = #tpu.core_type<tc>, window_params = [{transform_indices = @transform_0, window_bounds = array<i64: 1, 8, 32>}, {pipeline_mode = #tpu.pipeline_mode<synchronous>, transform_indices = @transform_1, window_bounds = array<i64: 1, 32>}, {pipeline_mode = #tpu.pipeline_mode<synchronous>, transform_indices = @transform_2, window_bounds = array<i64: 1, 32>}, {pipeline_mode = #tpu.pipeline_mode<synchronous>, transform_indices = @transform_3, window_bounds = array<i64: 32, 96>}, {pipeline_mode = #tpu.pipeline_mode<synchronous>, transform_indices = @transform_4, window_bounds = array<i64: 1, 96>}, {pipeline_mode = #tpu.pipeline_mode<synchronous>, transform_indices = @transform_5, window_bounds = array<i64: 32, 32>}, {pipeline_mode = #tpu.pipeline_mode<synchronous>, transform_indices = @transform_6, window_bounds = array<i64: 1, 32>}, {pipeline_mode = #tpu.pipeline_mode<synchronous>, transform_indices = @transform_7, window_bounds = array<i64: 8, 8>}, {transform_indices = @transform_8, window_bounds = array<i64: 1, 8, 32>}]} {
    %c0 = arith.constant 0 : index
    %c0_0 = arith.constant 0 : index
    %c0_1 = arith.constant 0 : index
    %0 = vector.load %arg1[%c0, %c0_0, %c0_1] : memref<1x8x32xf32, #tpu.memory_space<vmem>>, vector<1x8x32xf32>
    %1 = vector.shape_cast %0 : vector<1x8x32xf32> to vector<8x32xf32>
    %cst = arith.constant dense<0.000000e+00> : vector<8xf32>
    %2 = vector.multi_reduction <add>, %1, %cst [1] : vector<8x32xf32> to vector<8xf32>
    %3 = vector.shape_cast %2 : vector<8xf32> to vector<8x1xf32>
    %cst_2 = arith.constant 3.200000e+01 : f32
    %4 = vector.broadcast %cst_2 : f32 to vector<8x1xf32>
    %5 = arith.divf %3, %4 : vector<8x1xf32>
    %6 = vector.broadcast %5 : vector<8x1xf32> to vector<8x32xf32>
    %7 = arith.subf %1, %6 : vector<8x32xf32>
    %8 = arith.mulf %7, %7 : vector<8x32xf32>
    %cst_3 = arith.constant dense<0.000000e+00> : vector<8xf32>
    %9 = vector.multi_reduction <add>, %8, %cst_3 [1] : vector<8x32xf32> to vector<8xf32>
    %10 = vector.shape_cast %9 : vector<8xf32> to vector<8x1xf32>
    %cst_4 = arith.constant 3.200000e+01 : f32
    %11 = vector.broadcast %cst_4 : f32 to vector<8x1xf32>
    %12 = arith.divf %10, %11 : vector<8x1xf32>
    %13 = vector.broadcast %5 : vector<8x1xf32> to vector<8x32xf32>
    %14 = arith.subf %1, %13 : vector<8x32xf32>
    %cst_5 = arith.constant 9.99999974E-6 : f32
    %15 = vector.broadcast %cst_5 : f32 to vector<8x1xf32>
    %16 = arith.addf %12, %15 : vector<8x1xf32>
    %17 = math.rsqrt %16 : vector<8x1xf32>
    %18 = vector.broadcast %17 : vector<8x1xf32> to vector<8x32xf32>
    %19 = arith.mulf %14, %18 : vector<8x32xf32>
    %c0_6 = arith.constant 0 : index
    %c0_7 = arith.constant 0 : index
    %20 = vector.load %arg2[%c0_6, %c0_7] : memref<1x32xf32, #tpu.memory_space<vmem>>, vector<1x32xf32>
    %21 = vector.broadcast %20 : vector<1x32xf32> to vector<8x32xf32>
    %22 = arith.mulf %19, %21 : vector<8x32xf32>
    %c0_8 = arith.constant 0 : index
    %c0_9 = arith.constant 0 : index
    %23 = vector.load %arg3[%c0_8, %c0_9] : memref<1x32xf32, #tpu.memory_space<vmem>>, vector<1x32xf32>
    %24 = vector.broadcast %23 : vector<1x32xf32> to vector<8x32xf32>
    %25 = arith.addf %22, %24 : vector<8x32xf32>
    %26 = arith.truncf %25 : vector<8x32xf32> to vector<8x32xbf16>
    %c0_10 = arith.constant 0 : index
    %c0_11 = arith.constant 0 : index
    %27 = vector.load %arg4[%c0_10, %c0_11] : memref<32x96xbf16, #tpu.memory_space<vmem>>, vector<32x96xbf16>
    %cst_12 = arith.constant dense<0.000000e+00> : vector<8x96xf32>
    %28 = tpu.matmul %26, %27, %cst_12 {dimension_numbers = #tpu.dot_dimension_numbers<[1], [0], [0], [1], [0, 0, 1, 1], [], []>} : vector<8x32xbf16>, vector<32x96xbf16>, vector<8x96xf32> -> vector<8x96xf32>
    %c0_13 = arith.constant 0 : index
    %c0_14 = arith.constant 0 : index
    %29 = vector.load %arg5[%c0_13, %c0_14] : memref<1x96xf32, #tpu.memory_space<vmem>>, vector<1x96xf32>
    %30 = vector.broadcast %29 : vector<1x96xf32> to vector<8x96xf32>
    %31 = arith.addf %28, %30 : vector<8x96xf32>
    %32 = vector.extract_strided_slice %31 {offsets = [0, 0], sizes = [8, 32], strides = [1, 1]} : vector<8x96xf32> to vector<8x32xf32>
    %33 = arith.truncf %32 : vector<8x32xf32> to vector<8x32xbf16>
    %34 = vector.extract_strided_slice %31 {offsets = [0, 32], sizes = [8, 32], strides = [1, 1]} : vector<8x96xf32> to vector<8x32xf32>
    %35 = arith.truncf %34 : vector<8x32xf32> to vector<8x32xbf16>
    %36 = vector.extract_strided_slice %31 {offsets = [0, 64], sizes = [8, 32], strides = [1, 1]} : vector<8x96xf32> to vector<8x32xf32>
    %37 = arith.truncf %36 : vector<8x32xf32> to vector<8x32xbf16>
    %c0_15 = arith.constant 0 : index
    %c0_16 = arith.constant 0 : index
    %38 = vector.load %arg8[%c0_15, %c0_16] : memref<8x8xf32, #tpu.memory_space<vmem>>, vector<8x8xf32>
    %39 = vector.extract_strided_slice %33 {offsets = [0, 0], sizes = [8, 8], strides = [1, 1]} : vector<8x32xbf16> to vector<8x8xbf16>
    %40 = vector.extract_strided_slice %35 {offsets = [0, 0], sizes = [8, 8], strides = [1, 1]} : vector<8x32xbf16> to vector<8x8xbf16>
    %41 = vector.extract_strided_slice %37 {offsets = [0, 0], sizes = [8, 8], strides = [1, 1]} : vector<8x32xbf16> to vector<8x8xbf16>
    %cst_17 = arith.constant dense<0.000000e+00> : vector<8x8xf32>
    %42 = tpu.matmul %39, %40, %cst_17 {dimension_numbers = #tpu.dot_dimension_numbers<[1], [1], [0], [0], [0, 0, 1, 0], [], []>} : vector<8x8xbf16>, vector<8x8xbf16>, vector<8x8xf32> -> vector<8x8xf32>
    %43 = arith.addf %42, %38 : vector<8x8xf32>
    %cst_18 = arith.constant dense<0xFF800000> : vector<8xf32>
    %44 = vector.multi_reduction <maximumf>, %43, %cst_18 [1] : vector<8x8xf32> to vector<8xf32>
    %45 = vector.shape_cast %44 : vector<8xf32> to vector<8x1xf32>
    %46 = vector.broadcast %45 : vector<8x1xf32> to vector<8x8xf32>
    %47 = arith.subf %43, %46 : vector<8x8xf32>
    %48 = math.exp %47 : vector<8x8xf32>
    %cst_19 = arith.constant dense<0.000000e+00> : vector<8xf32>
    %49 = vector.multi_reduction <add>, %48, %cst_19 [1] : vector<8x8xf32> to vector<8xf32>
    %50 = vector.shape_cast %49 : vector<8xf32> to vector<8x1xf32>
    %51 = tpu.reciprocal %50 {approx = true} : vector<8x1xf32> -> vector<8x1xf32>
    %52 = vector.broadcast %51 : vector<8x1xf32> to vector<8x8xf32>
    %53 = arith.mulf %48, %52 : vector<8x8xf32>
    %54 = arith.truncf %53 : vector<8x8xf32> to vector<8x8xbf16>
    %cst_20 = arith.constant dense<0.000000e+00> : vector<8x8xf32>
    %55 = tpu.matmul %54, %41, %cst_20 {dimension_numbers = #tpu.dot_dimension_numbers<[1], [0], [0], [1], [0, 0, 1, 1], [], []>} : vector<8x8xbf16>, vector<8x8xbf16>, vector<8x8xf32> -> vector<8x8xf32>
    %56 = vector.extract_strided_slice %33 {offsets = [0, 8], sizes = [8, 8], strides = [1, 1]} : vector<8x32xbf16> to vector<8x8xbf16>
    %57 = vector.extract_strided_slice %35 {offsets = [0, 8], sizes = [8, 8], strides = [1, 1]} : vector<8x32xbf16> to vector<8x8xbf16>
    %58 = vector.extract_strided_slice %37 {offsets = [0, 8], sizes = [8, 8], strides = [1, 1]} : vector<8x32xbf16> to vector<8x8xbf16>
    %cst_21 = arith.constant dense<0.000000e+00> : vector<8x8xf32>
    %59 = tpu.matmul %56, %57, %cst_21 {dimension_numbers = #tpu.dot_dimension_numbers<[1], [1], [0], [0], [0, 0, 1, 0], [], []>} : vector<8x8xbf16>, vector<8x8xbf16>, vector<8x8xf32> -> vector<8x8xf32>
    %60 = arith.addf %59, %38 : vector<8x8xf32>
    %cst_22 = arith.constant dense<0xFF800000> : vector<8xf32>
    %61 = vector.multi_reduction <maximumf>, %60, %cst_22 [1] : vector<8x8xf32> to vector<8xf32>
    %62 = vector.shape_cast %61 : vector<8xf32> to vector<8x1xf32>
    %63 = vector.broadcast %62 : vector<8x1xf32> to vector<8x8xf32>
    %64 = arith.subf %60, %63 : vector<8x8xf32>
    %65 = math.exp %64 : vector<8x8xf32>
    %cst_23 = arith.constant dense<0.000000e+00> : vector<8xf32>
    %66 = vector.multi_reduction <add>, %65, %cst_23 [1] : vector<8x8xf32> to vector<8xf32>
    %67 = vector.shape_cast %66 : vector<8xf32> to vector<8x1xf32>
    %68 = tpu.reciprocal %67 {approx = true} : vector<8x1xf32> -> vector<8x1xf32>
    %69 = vector.broadcast %68 : vector<8x1xf32> to vector<8x8xf32>
    %70 = arith.mulf %65, %69 : vector<8x8xf32>
    %71 = arith.truncf %70 : vector<8x8xf32> to vector<8x8xbf16>
    %cst_24 = arith.constant dense<0.000000e+00> : vector<8x8xf32>
    %72 = tpu.matmul %71, %58, %cst_24 {dimension_numbers = #tpu.dot_dimension_numbers<[1], [0], [0], [1], [0, 0, 1, 1], [], []>} : vector<8x8xbf16>, vector<8x8xbf16>, vector<8x8xf32> -> vector<8x8xf32>
    %73 = vector.extract_strided_slice %33 {offsets = [0, 16], sizes = [8, 8], strides = [1, 1]} : vector<8x32xbf16> to vector<8x8xbf16>
    %74 = vector.extract_strided_slice %35 {offsets = [0, 16], sizes = [8, 8], strides = [1, 1]} : vector<8x32xbf16> to vector<8x8xbf16>
    %75 = vector.extract_strided_slice %37 {offsets = [0, 16], sizes = [8, 8], strides = [1, 1]} : vector<8x32xbf16> to vector<8x8xbf16>
    %cst_25 = arith.constant dense<0.000000e+00> : vector<8x8xf32>
    %76 = tpu.matmul %73, %74, %cst_25 {dimension_numbers = #tpu.dot_dimension_numbers<[1], [1], [0], [0], [0, 0, 1, 0], [], []>} : vector<8x8xbf16>, vector<8x8xbf16>, vector<8x8xf32> -> vector<8x8xf32>
    %77 = arith.addf %76, %38 : vector<8x8xf32>
    %cst_26 = arith.constant dense<0xFF800000> : vector<8xf32>
    %78 = vector.multi_reduction <maximumf>, %77, %cst_26 [1] : vector<8x8xf32> to vector<8xf32>
    %79 = vector.shape_cast %78 : vector<8xf32> to vector<8x1xf32>
    %80 = vector.broadcast %79 : vector<8x1xf32> to vector<8x8xf32>
    %81 = arith.subf %77, %80 : vector<8x8xf32>
    %82 = math.exp %81 : vector<8x8xf32>
    %cst_27 = arith.constant dense<0.000000e+00> : vector<8xf32>
    %83 = vector.multi_reduction <add>, %82, %cst_27 [1] : vector<8x8xf32> to vector<8xf32>
    %84 = vector.shape_cast %83 : vector<8xf32> to vector<8x1xf32>
    %85 = tpu.reciprocal %84 {approx = true} : vector<8x1xf32> -> vector<8x1xf32>
    %86 = vector.broadcast %85 : vector<8x1xf32> to vector<8x8xf32>
    %87 = arith.mulf %82, %86 : vector<8x8xf32>
    %88 = arith.truncf %87 : vector<8x8xf32> to vector<8x8xbf16>
    %cst_28 = arith.constant dense<0.000000e+00> : vector<8x8xf32>
    %89 = tpu.matmul %88, %75, %cst_28 {dimension_numbers = #tpu.dot_dimension_numbers<[1], [0], [0], [1], [0, 0, 1, 1], [], []>} : vector<8x8xbf16>, vector<8x8xbf16>, vector<8x8xf32> -> vector<8x8xf32>
    %90 = vector.extract_strided_slice %33 {offsets = [0, 24], sizes = [8, 8], strides = [1, 1]} : vector<8x32xbf16> to vector<8x8xbf16>
    %91 = vector.extract_strided_slice %35 {offsets = [0, 24], sizes = [8, 8], strides = [1, 1]} : vector<8x32xbf16> to vector<8x8xbf16>
    %92 = vector.extract_strided_slice %37 {offsets = [0, 24], sizes = [8, 8], strides = [1, 1]} : vector<8x32xbf16> to vector<8x8xbf16>
    %cst_29 = arith.constant dense<0.000000e+00> : vector<8x8xf32>
    %93 = tpu.matmul %90, %91, %cst_29 {dimension_numbers = #tpu.dot_dimension_numbers<[1], [1], [0], [0], [0, 0, 1, 0], [], []>} : vector<8x8xbf16>, vector<8x8xbf16>, vector<8x8xf32> -> vector<8x8xf32>
    %94 = arith.addf %93, %38 : vector<8x8xf32>
    %cst_30 = arith.constant dense<0xFF800000> : vector<8xf32>
    %95 = vector.multi_reduction <maximumf>, %94, %cst_30 [1] : vector<8x8xf32> to vector<8xf32>
    %96 = vector.shape_cast %95 : vector<8xf32> to vector<8x1xf32>
    %97 = vector.broadcast %96 : vector<8x1xf32> to vector<8x8xf32>
    %98 = arith.subf %94, %97 : vector<8x8xf32>
    %99 = math.exp %98 : vector<8x8xf32>
    %cst_31 = arith.constant dense<0.000000e+00> : vector<8xf32>
    %100 = vector.multi_reduction <add>, %99, %cst_31 [1] : vector<8x8xf32> to vector<8xf32>
    %101 = vector.shape_cast %100 : vector<8xf32> to vector<8x1xf32>
    %102 = tpu.reciprocal %101 {approx = true} : vector<8x1xf32> -> vector<8x1xf32>
    %103 = vector.broadcast %102 : vector<8x1xf32> to vector<8x8xf32>
    %104 = arith.mulf %99, %103 : vector<8x8xf32>
    %105 = arith.truncf %104 : vector<8x8xf32> to vector<8x8xbf16>
    %cst_32 = arith.constant dense<0.000000e+00> : vector<8x8xf32>
    %106 = tpu.matmul %105, %92, %cst_32 {dimension_numbers = #tpu.dot_dimension_numbers<[1], [0], [0], [1], [0, 0, 1, 1], [], []>} : vector<8x8xbf16>, vector<8x8xbf16>, vector<8x8xf32> -> vector<8x8xf32>
    %107 = tpu.concatenate %55, %72, %89, %106 in 1 : vector<8x8xf32>, vector<8x8xf32>, vector<8x8xf32>, vector<8x8xf32> -> vector<8x32xf32>
    %c0_33 = arith.constant 0 : index
    %c0_34 = arith.constant 0 : index
    %108 = vector.load %arg10[%c0_33, %c0_34] : memref<8x32xf32, #tpu.memory_space<vmem>>, vector<8x32xf32>
    tpu.vector_store %arg10[%c0_33, %c0_34], %107 {strides = array<i32>} : memref<8x32xf32, #tpu.memory_space<vmem>>, vector<8x32xf32>,
    %c0_35 = arith.constant 0 : index
    %c0_36 = arith.constant 0 : index
    %109 = vector.load %arg10[%c0_35, %c0_36] : memref<8x32xf32, #tpu.memory_space<vmem>>, vector<8x32xf32>
    %110 = arith.truncf %109 : vector<8x32xf32> to vector<8x32xbf16>
    %c0_37 = arith.constant 0 : index
    %c0_38 = arith.constant 0 : index
    %111 = vector.load %arg6[%c0_37, %c0_38] : memref<32x32xbf16, #tpu.memory_space<vmem>>, vector<32x32xbf16>
    %cst_39 = arith.constant dense<0.000000e+00> : vector<8x32xf32>
    %112 = tpu.matmul %110, %111, %cst_39 {dimension_numbers = #tpu.dot_dimension_numbers<[1], [0], [0], [1], [0, 0, 1, 1], [], []>} : vector<8x32xbf16>, vector<32x32xbf16>, vector<8x32xf32> -> vector<8x32xf32>
    %c0_40 = arith.constant 0 : index
    %c0_41 = arith.constant 0 : index
    %113 = vector.load %arg7[%c0_40, %c0_41] : memref<1x32xf32, #tpu.memory_space<vmem>>, vector<1x32xf32>
    %114 = vector.broadcast %113 : vector<1x32xf32> to vector<8x32xf32>
    %115 = arith.addf %112, %114 : vector<8x32xf32>
    %116 = arith.addf %1, %115 : vector<8x32xf32>
    %c0_42 = arith.constant 0 : index
    %c0_43 = arith.constant 0 : index
    %c0_44 = arith.constant 0 : index
    %117 = vector.load %arg9[%c0_42, %c0_43, %c0_44] : memref<1x8x32xf32, #tpu.memory_space<vmem>>, vector<1x8x32xf32>
    %118 = vector.shape_cast %117 : vector<1x8x32xf32> to vector<8x32xf32>
    %119 = vector.shape_cast %116 : vector<8x32xf32> to vector<1x8x32xf32>
    tpu.vector_store %arg9[%c0_42, %c0_43, %c0_44], %119 {strides = array<i32>} : memref<1x8x32xf32, #tpu.memory_space<vmem>>, vector<1x8x32xf32>,
    return
  }
  func.func @transform_0(%arg0: i32) -> (i32, i32, i32) {
    %c0_i32 = arith.constant 0 : i32
    %c0_i32_0 = arith.constant 0 : i32
    %c0_i32_1 = arith.constant 0 : i32
    return %arg0, %c0_i32, %c0_i32_0 : i32, i32, i32
  }
  func.func @transform_1(%arg0: i32) -> (i32, i32) {
    %c0_i32 = arith.constant 0 : i32
    %c0_i32_0 = arith.constant 0 : i32
    %c0_i32_1 = arith.constant 0 : i32
    return %c0_i32, %c0_i32_0 : i32, i32
  }
  func.func @transform_2(%arg0: i32) -> (i32, i32) {
    %c0_i32 = arith.constant 0 : i32
    %c0_i32_0 = arith.constant 0 : i32
    %c0_i32_1 = arith.constant 0 : i32
    return %c0_i32, %c0_i32_0 : i32, i32
  }
  func.func @transform_3(%arg0: i32) -> (i32, i32) {
    %c0_i32 = arith.constant 0 : i32
    %c0_i32_0 = arith.constant 0 : i32
    %c0_i32_1 = arith.constant 0 : i32
    return %c0_i32, %c0_i32_0 : i32, i32
  }
  func.func @transform_4(%arg0: i32) -> (i32, i32) {
    %c0_i32 = arith.constant 0 : i32
    %c0_i32_0 = arith.constant 0 : i32
    %c0_i32_1 = arith.constant 0 : i32
    return %c0_i32, %c0_i32_0 : i32, i32
  }
  func.func @transform_5(%arg0: i32) -> (i32, i32) {
    %c0_i32 = arith.constant 0 : i32
    %c0_i32_0 = arith.constant 0 : i32
    %c0_i32_1 = arith.constant 0 : i32
    return %c0_i32, %c0_i32_0 : i32, i32
  }
  func.func @transform_6(%arg0: i32) -> (i32, i32) {
    %c0_i32 = arith.constant 0 : i32
    %c0_i32_0 = arith.constant 0 : i32
    %c0_i32_1 = arith.constant 0 : i32
    return %c0_i32, %c0_i32_0 : i32, i32
  }
  func.func @transform_7(%arg0: i32) -> (i32, i32) {
    %c0_i32 = arith.constant 0 : i32
    %c0_i32_0 = arith.constant 0 : i32
    %c0_i32_1 = arith.constant 0 : i32
    return %c0_i32, %c0_i32_0 : i32, i32
  }
  func.func @transform_8(%arg0: i32) -> (i32, i32, i32) {
    %c0_i32 = arith.constant 0 : i32
    %c0_i32_0 = arith.constant 0 : i32
    %c0_i32_1 = arith.constant 0 : i32
    return %arg0, %c0_i32, %c0_i32_0 : i32, i32, i32
  }
}

module attributes {stable_mosaic.version = 11 : i64} {
  func.func @ln_ffn_residual_kernel(%arg0: i32, %arg1: memref<16x32xf32, #tpu.memory_space<vmem>>, %arg2: memref<1x32xf32, #tpu.memory_space<vmem>>, %arg3: memref<1x32xf32, #tpu.memory_space<vmem>>, %arg4: memref<32x128xbf16, #tpu.memory_space<vmem>>, %arg5: memref<1x128xf32, #tpu.memory_space<vmem>>, %arg6: memref<128x32xbf16, #tpu.memory_space<vmem>>, %arg7: memref<1x32xf32, #tpu.memory_space<vmem>>, %arg8: memref<16x32xf32, #tpu.memory_space<vmem>>) attributes {dimension_semantics = [#tpu.dimension_semantics<parallel>], iteration_bounds = array<i64: 1>, scalar_prefetch = 0 : i64, scratch_operands = 0 : i64, tpu.core_type = #tpu.core_type<tc>, window_params = [{transform_indices = @transform_0, window_bounds = array<i64: 16, 32>}, {pipeline_mode = #tpu.pipeline_mode<synchronous>, transform_indices = @transform_1, window_bounds = array<i64: 1, 32>}, {pipeline_mode = #tpu.pipeline_mode<synchronous>, transform_indices = @transform_2, window_bounds = array<i64: 1, 32>}, {pipeline_mode = #tpu.pipeline_mode<synchronous>, transform_indices = @transform_3, window_bounds = array<i64: 32, 128>}, {pipeline_mode = #tpu.pipeline_mode<synchronous>, transform_indices = @transform_4, window_bounds = array<i64: 1, 128>}, {pipeline_mode = #tpu.pipeline_mode<synchronous>, transform_indices = @transform_5, window_bounds = array<i64: 128, 32>}, {pipeline_mode = #tpu.pipeline_mode<synchronous>, transform_indices = @transform_6, window_bounds = array<i64: 1, 32>}, {transform_indices = @transform_7, window_bounds = array<i64: 16, 32>}]} {
    %c0 = arith.constant 0 : index
    %c0_0 = arith.constant 0 : index
    %0 = vector.load %arg1[%c0, %c0_0] : memref<16x32xf32, #tpu.memory_space<vmem>>, vector<16x32xf32>
    %cst = arith.constant dense<0.000000e+00> : vector<16xf32>
    %1 = vector.multi_reduction <add>, %0, %cst [1] : vector<16x32xf32> to vector<16xf32>
    %2 = vector.shape_cast %1 : vector<16xf32> to vector<16x1xf32>
    %cst_1 = arith.constant 3.200000e+01 : f32
    %3 = vector.broadcast %cst_1 : f32 to vector<16x1xf32>
    %4 = arith.divf %2, %3 : vector<16x1xf32>
    %5 = vector.broadcast %4 : vector<16x1xf32> to vector<16x32xf32>
    %6 = arith.subf %0, %5 : vector<16x32xf32>
    %7 = arith.mulf %6, %6 : vector<16x32xf32>
    %cst_2 = arith.constant dense<0.000000e+00> : vector<16xf32>
    %8 = vector.multi_reduction <add>, %7, %cst_2 [1] : vector<16x32xf32> to vector<16xf32>
    %9 = vector.shape_cast %8 : vector<16xf32> to vector<16x1xf32>
    %cst_3 = arith.constant 3.200000e+01 : f32
    %10 = vector.broadcast %cst_3 : f32 to vector<16x1xf32>
    %11 = arith.divf %9, %10 : vector<16x1xf32>
    %12 = vector.broadcast %4 : vector<16x1xf32> to vector<16x32xf32>
    %13 = arith.subf %0, %12 : vector<16x32xf32>
    %cst_4 = arith.constant 9.99999974E-6 : f32
    %14 = vector.broadcast %cst_4 : f32 to vector<16x1xf32>
    %15 = arith.addf %11, %14 : vector<16x1xf32>
    %16 = math.rsqrt %15 : vector<16x1xf32>
    %17 = vector.broadcast %16 : vector<16x1xf32> to vector<16x32xf32>
    %18 = arith.mulf %13, %17 : vector<16x32xf32>
    %c0_5 = arith.constant 0 : index
    %c0_6 = arith.constant 0 : index
    %19 = vector.load %arg2[%c0_5, %c0_6] : memref<1x32xf32, #tpu.memory_space<vmem>>, vector<1x32xf32>
    %20 = vector.broadcast %19 : vector<1x32xf32> to vector<16x32xf32>
    %21 = arith.mulf %18, %20 : vector<16x32xf32>
    %c0_7 = arith.constant 0 : index
    %c0_8 = arith.constant 0 : index
    %22 = vector.load %arg3[%c0_7, %c0_8] : memref<1x32xf32, #tpu.memory_space<vmem>>, vector<1x32xf32>
    %23 = vector.broadcast %22 : vector<1x32xf32> to vector<16x32xf32>
    %24 = arith.addf %21, %23 : vector<16x32xf32>
    %25 = arith.truncf %24 : vector<16x32xf32> to vector<16x32xbf16>
    %c0_9 = arith.constant 0 : index
    %c0_10 = arith.constant 0 : index
    %26 = vector.load %arg4[%c0_9, %c0_10] : memref<32x128xbf16, #tpu.memory_space<vmem>>, vector<32x128xbf16>
    %cst_11 = arith.constant dense<0.000000e+00> : vector<16x128xf32>
    %27 = tpu.matmul %25, %26, %cst_11 {dimension_numbers = #tpu.dot_dimension_numbers<[1], [0], [0], [1], [0, 0, 1, 1], [], []>} : vector<16x32xbf16>, vector<32x128xbf16>, vector<16x128xf32> -> vector<16x128xf32>
    %c0_12 = arith.constant 0 : index
    %c0_13 = arith.constant 0 : index
    %28 = vector.load %arg5[%c0_12, %c0_13] : memref<1x128xf32, #tpu.memory_space<vmem>>, vector<1x128xf32>
    %29 = vector.broadcast %28 : vector<1x128xf32> to vector<16x128xf32>
    %30 = arith.addf %27, %29 : vector<16x128xf32>
    %cst_14 = arith.constant 1.702000e+00 : f32
    %31 = vector.broadcast %cst_14 : f32 to vector<16x128xf32>
    %32 = arith.mulf %31, %30 : vector<16x128xf32>
    %33 = arith.negf %32 : vector<16x128xf32>
    %34 = math.exp %33 : vector<16x128xf32>
    %cst_15 = arith.constant 1.000000e+00 : f32
    %35 = vector.broadcast %cst_15 : f32 to vector<16x128xf32>
    %36 = arith.addf %35, %34 : vector<16x128xf32>
    %37 = arith.divf %35, %36 : vector<16x128xf32>
    %38 = arith.mulf %30, %37 : vector<16x128xf32>
    %39 = arith.truncf %38 : vector<16x128xf32> to vector<16x128xbf16>
    %c0_16 = arith.constant 0 : index
    %c0_17 = arith.constant 0 : index
    %40 = vector.load %arg6[%c0_16, %c0_17] : memref<128x32xbf16, #tpu.memory_space<vmem>>, vector<128x32xbf16>
    %cst_18 = arith.constant dense<0.000000e+00> : vector<16x32xf32>
    %41 = tpu.matmul %39, %40, %cst_18 {dimension_numbers = #tpu.dot_dimension_numbers<[1], [0], [0], [1], [0, 0, 1, 1], [], []>} : vector<16x128xbf16>, vector<128x32xbf16>, vector<16x32xf32> -> vector<16x32xf32>
    %c0_19 = arith.constant 0 : index
    %c0_20 = arith.constant 0 : index
    %42 = vector.load %arg7[%c0_19, %c0_20] : memref<1x32xf32, #tpu.memory_space<vmem>>, vector<1x32xf32>
    %43 = vector.broadcast %42 : vector<1x32xf32> to vector<16x32xf32>
    %44 = arith.addf %41, %43 : vector<16x32xf32>
    %45 = arith.addf %0, %44 : vector<16x32xf32>
    %c0_21 = arith.constant 0 : index
    %c0_22 = arith.constant 0 : index
    %46 = vector.load %arg8[%c0_21, %c0_22] : memref<16x32xf32, #tpu.memory_space<vmem>>, vector<16x32xf32>
    tpu.vector_store %arg8[%c0_21, %c0_22], %45 {strides = array<i32>} : memref<16x32xf32, #tpu.memory_space<vmem>>, vector<16x32xf32>,
    return
  }
  func.func @transform_0(%arg0: i32) -> (i32, i32) {
    %c0_i32 = arith.constant 0 : i32
    %c0_i32_0 = arith.constant 0 : i32
    return %arg0, %c0_i32 : i32, i32
  }
  func.func @transform_1(%arg0: i32) -> (i32, i32) {
    %c0_i32 = arith.constant 0 : i32
    %c0_i32_0 = arith.constant 0 : i32
    %c0_i32_1 = arith.constant 0 : i32
    return %c0_i32, %c0_i32_0 : i32, i32
  }
  func.func @transform_2(%arg0: i32) -> (i32, i32) {
    %c0_i32 = arith.constant 0 : i32
    %c0_i32_0 = arith.constant 0 : i32
    %c0_i32_1 = arith.constant 0 : i32
    return %c0_i32, %c0_i32_0 : i32, i32
  }
  func.func @transform_3(%arg0: i32) -> (i32, i32) {
    %c0_i32 = arith.constant 0 : i32
    %c0_i32_0 = arith.constant 0 : i32
    %c0_i32_1 = arith.constant 0 : i32
    return %c0_i32, %c0_i32_0 : i32, i32
  }
  func.func @transform_4(%arg0: i32) -> (i32, i32) {
    %c0_i32 = arith.constant 0 : i32
    %c0_i32_0 = arith.constant 0 : i32
    %c0_i32_1 = arith.constant 0 : i32
    return %c0_i32, %c0_i32_0 : i32, i32
  }
  func.func @transform_5(%arg0: i32) -> (i32, i32) {
    %c0_i32 = arith.constant 0 : i32
    %c0_i32_0 = arith.constant 0 : i32
    %c0_i32_1 = arith.constant 0 : i32
    return %c0_i32, %c0_i32_0 : i32, i32
  }
  func.func @transform_6(%arg0: i32) -> (i32, i32) {
    %c0_i32 = arith.constant 0 : i32
    %c0_i32_0 = arith.constant 0 : i32
    %c0_i32_1 = arith.constant 0 : i32
    return %c0_i32, %c0_i32_0 : i32, i32
  }
  func.func @transform_7(%arg0: i32) -> (i32, i32) {
    %c0_i32 = arith.constant 0 : i32
    %c0_i32_0 = arith.constant 0 : i32
    return %arg0, %c0_i32 : i32, i32
  }
}

module attributes {stable_mosaic.version = 11 : i64} {
  func.func @ln_proj_kernel(%arg0: memref<2x32xf32, #tpu.memory_space<vmem>>, %arg1: memref<1x32xf32, #tpu.memory_space<vmem>>, %arg2: memref<1x32xf32, #tpu.memory_space<vmem>>, %arg3: memref<32x32xbf16, #tpu.memory_space<vmem>>, %arg4: memref<2x32xf32, #tpu.memory_space<vmem>>) attributes {dimension_semantics = [], scalar_prefetch = 0 : i64, scratch_operands = 0 : i64, tpu.core_type = #tpu.core_type<tc>} {
    %c0 = arith.constant 0 : index
    %c0_0 = arith.constant 0 : index
    %0 = vector.load %arg0[%c0, %c0_0] : memref<2x32xf32, #tpu.memory_space<vmem>>, vector<2x32xf32>
    %cst = arith.constant dense<0.000000e+00> : vector<2xf32>
    %1 = vector.multi_reduction <add>, %0, %cst [1] : vector<2x32xf32> to vector<2xf32>
    %2 = vector.shape_cast %1 : vector<2xf32> to vector<2x1xf32>
    %cst_1 = arith.constant 3.200000e+01 : f32
    %3 = vector.broadcast %cst_1 : f32 to vector<2x1xf32>
    %4 = arith.divf %2, %3 : vector<2x1xf32>
    %5 = vector.broadcast %4 : vector<2x1xf32> to vector<2x32xf32>
    %6 = arith.subf %0, %5 : vector<2x32xf32>
    %7 = arith.mulf %6, %6 : vector<2x32xf32>
    %cst_2 = arith.constant dense<0.000000e+00> : vector<2xf32>
    %8 = vector.multi_reduction <add>, %7, %cst_2 [1] : vector<2x32xf32> to vector<2xf32>
    %9 = vector.shape_cast %8 : vector<2xf32> to vector<2x1xf32>
    %cst_3 = arith.constant 3.200000e+01 : f32
    %10 = vector.broadcast %cst_3 : f32 to vector<2x1xf32>
    %11 = arith.divf %9, %10 : vector<2x1xf32>
    %12 = vector.broadcast %4 : vector<2x1xf32> to vector<2x32xf32>
    %13 = arith.subf %0, %12 : vector<2x32xf32>
    %cst_4 = arith.constant 9.99999974E-6 : f32
    %14 = vector.broadcast %cst_4 : f32 to vector<2x1xf32>
    %15 = arith.addf %11, %14 : vector<2x1xf32>
    %16 = math.rsqrt %15 : vector<2x1xf32>
    %17 = vector.broadcast %16 : vector<2x1xf32> to vector<2x32xf32>
    %18 = arith.mulf %13, %17 : vector<2x32xf32>
    %c0_5 = arith.constant 0 : index
    %c0_6 = arith.constant 0 : index
    %19 = vector.load %arg1[%c0_5, %c0_6] : memref<1x32xf32, #tpu.memory_space<vmem>>, vector<1x32xf32>
    %20 = vector.broadcast %19 : vector<1x32xf32> to vector<2x32xf32>
    %21 = arith.mulf %18, %20 : vector<2x32xf32>
    %c0_7 = arith.constant 0 : index
    %c0_8 = arith.constant 0 : index
    %22 = vector.load %arg2[%c0_7, %c0_8] : memref<1x32xf32, #tpu.memory_space<vmem>>, vector<1x32xf32>
    %23 = vector.broadcast %22 : vector<1x32xf32> to vector<2x32xf32>
    %24 = arith.addf %21, %23 : vector<2x32xf32>
    %25 = arith.truncf %24 : vector<2x32xf32> to vector<2x32xbf16>
    %c0_9 = arith.constant 0 : index
    %c0_10 = arith.constant 0 : index
    %26 = vector.load %arg3[%c0_9, %c0_10] : memref<32x32xbf16, #tpu.memory_space<vmem>>, vector<32x32xbf16>
    %cst_11 = arith.constant dense<0.000000e+00> : vector<2x32xf32>
    %27 = tpu.matmul %25, %26, %cst_11 {dimension_numbers = #tpu.dot_dimension_numbers<[1], [0], [0], [1], [0, 0, 1, 1], [], []>} : vector<2x32xbf16>, vector<32x32xbf16>, vector<2x32xf32> -> vector<2x32xf32>
    %c0_12 = arith.constant 0 : index
    %c0_13 = arith.constant 0 : index
    %28 = vector.load %arg4[%c0_12, %c0_13] : memref<2x32xf32, #tpu.memory_space<vmem>>, vector<2x32xf32>
    tpu.vector_store %arg4[%c0_12, %c0_13], %27 {strides = array<i32>} : memref<2x32xf32, #tpu.memory_space<vmem>>, vector<2x32xf32>,
    return
  }
}

</mosaic_0001>

<bundles_post_ra>
// kernel: text_encoder_forward.9
= control target key start
LH: loop header
LB: loop body
LE: loop exit
PB: predicated region body
PF: predicated region fallthrough
CT: control target
= control target key end

     0   :  { %vm20_vm0 = vcmask 254976   ;;  %s221_s0 = inlined_call_operand.vmem [shape: f32[2,32], index: 0, kind: input, shape index: {}]   ;;  %s222_s1 = inlined_call_operand.vmem [shape: f32[1,32], index: 1, kind: input, shape index: {}]   ;;  %s223_s2 = inlined_call_operand.vmem [shape: f32[1,32], index: 2, kind: input, shape index: {}]   ;;  %s224_s3 = inlined_call_operand.vmem [shape: bf16[32,32], index: 3, kind: input, shape index: {}]   ;;  %s225_s4 = inlined_call_operand.hbm [shape: f32[2,32], index: 4, kind: output, shape index: {}]  }
   0x1   :  { %v19_v0 = vld [vmem:[%s221_s0] sm:$0x3] }
   0x2   :  { %v21_v1 = vsel %vm20_vm0, %v19_v0, 0.0 }
   0x3   :  { %22 = vadd.xlane.f32.xlu0 %v21_v1 }
   0x4   :  { %9 = vsyncpa [#allocation3], 0  ;;  %v146_v7 = vld [vmem:[%s224_s3 + $0x8] sm:$0xff]   ;;  %v172_v8 = vmov 0.0   ;;  %vm173_vm1 = vmmov 0   ;;  %v147_v9 = vld [vmem:[%s224_s3] sm:$0xff]  }
   0x5   :  { %135 = vmatprep.subr.bf16.mxu0 %v172_v8  ;;  %139 = vmatprep.mubr.msk.bf16.mxu0 %vm173_vm1, %v172_v8  ;;  %v127_v14 = vld [vmem:[%s222_s1] ss:$0 sm:$0xff]  ;;  %vm68_vm2 = vcmask 261120   ;;  %s174_s3 = smov [#allocation2]  }
   0x6   :  { %136 = vmatpush3.bf16.msra.mxu0 %v146_v7  ;;  %v128_v16 = vld [vmem:[%s223_s2] ss:$0 sm:$0xff]  ;;  %s119_s24 = sshll.u32 %s174_s3, 4  ;;  %s120_s24 = int_to_ptr.vmem [resolvable:$true] %s119_s24 }
   0x7   :  { %137 = vmatprep.subr.bf16.mxu0 %v172_v8  ;;  %s150_s25 = scalar_lea.vmem %s120_s24, 32  ;;  %p155_p1 = scmp.lt.s32.totalorder %s120_s24, %s120_s24 }
   0x8   :  { %p151_p0 = scmp.ne.s32.totalorder %s120_s24, %s150_s25  ;;  %p156_p2 = scmp.lt.s32.totalorder %s150_s25, %s150_s25 }
   0xa   :  { %138 = vmatpush3.bf16.msra.mxu0 %v147_v9  ;;  %p157_p3 = por %p156_p2, %p155_p1 }
   0xc   :  { %p158_p4 = pnand %p157_p3, %p151_p0 }
  0x8c   :  { %v23_v2 = vpop.xlane.xlu0 %22 }
  0x8d   :  { %v25_v3 = vmul.f32 0.03125, %v23_v2 }
  0x8f   :  { %v26_v4 = vsub.f32 %v19_v0, %v25_v3 }
  0x91   :  { %v27_v5 = vmul.f32 %v26_v4, %v26_v4 }
  0x93   :  { %v28_v6 = vsel %vm20_vm0, %v27_v5, 0.0 }
  0x94   :  { %29 = vadd.xlane.f32.xlu0 %v28_v6 }
 0x11d   :  { %v30_v10 = vpop.xlane.xlu0 %29 }
 0x11e   :  { %v31_v11 = vmul.f32 0.03125, %v30_v10 }
 0x120   :  { %v32_v12 = vadd.f32 1e-05, %v31_v11 }
 0x122   :  { %148 = vrsqrt.f32 %v32_v12 }
 0x12f   :  { %v149_v13 = vpop.eup %148 }
 0x130   :  { %v34_v15 = vmul.f32 %v149_v13, %v26_v4 }
 0x132   :  { %v42_v17 = vmul.f32 %v127_v14, %v34_v15 }
 0x134   :  { %v50_v18 = vadd.f32 %v128_v16, %v42_v17 }
 0x136   :  { %v51_v19 = vpack.c.bf16 %v50_v18, %v50_v18 }
 0x138   :  { %140 = vmatmul.mubr.msk.bf16.vlgmr.msra.gmra.mxu0 %vm68_vm2, %v51_v19 }
 0x1f8   :  { %v106_v20 = vpop.f32.mrf.mxu0 }
 0x1f9   :  { %112 = vst.msk [vmem:[#allocation2] sm:$0x3] %vm20_vm0, %v106_v20 }
 0x1fa   :  { %v141_v21 = vpop.f32.mrf.mxu0 }
 0x1fb   :  { %161 = shalt.err (!%p158_p4)
}
 0x1fc   :  { %122 = dma.vmem_to_hbm [thread:$0]  %s120_s24, 32, %s225_s4, [#allocation3]   ;;  %v109_v22 = vpop.f32.mrf.mxu0 }
 0x1fe   :  { %v142_v23 = vpop.f32.mrf.mxu0 }
 0x1ff   :  { %170 = dma.done.wait [#allocation3], 32  }
 0x200   :  { %171 = vsyncadd [#allocation3], 4294967264 }
 0x201   :  { %126 = vsyncpa [#allocation3], 1 }

// kernel: text_encoder_forward.6
= control target key start
LH: loop header
LB: loop body
LE: loop exit
PB: predicated region body
PF: predicated region fallthrough
CT: control target
= control target key end

     0   :  { %vm29_vm0 = vcmask 261120   ;;  %v361_v14 = vmov 0.0   ;;  %vm362_vm1 = vmmov 0   ;;  %s474_s0 = inlined_call_operand.vmem [shape: f32[16,32], index: 0, kind: input, shape index: {}, may-alias: {0,7}]   ;;  %s475_s3 = inlined_call_operand.vmem [shape: bf16[32,128], index: 3, kind: input, shape index: {}]   ;;  %s476_s1 = inlined_call_operand.vmem [shape: f32[1,32], index: 1, kind: input, shape index: {}]   ;;  %s477_s2 = inlined_call_operand.vmem [shape: f32[1,32], index: 2, kind: input, shape index: {}]   ;;  %s478_s5 = inlined_call_operand.vmem [shape: bf16[128,32], index: 5, kind: input, shape index: {}]   ;;  %s479_s4 = inlined_call_operand.vmem [shape: f32[1,128], index: 4, kind: input, shape index: {}]   ;;  %s480_s6 = inlined_call_operand.vmem [shape: f32[1,32], index: 6, kind: input, shape index: {}]   ;;  %s481_s7 = inlined_call_operand.vmem [shape: f32[16,32], index: 7, kind: output, shape index: {}, may-alias: {0,7}]  }
   0x1   :  { %v406_v0 = vld [vmem:[%s474_s0] sm:$0xff]  ;;  %v411_v1 = vld [vmem:[%s474_s0 + $0x8] sm:$0xff]  ;;  %309 = vmatprep.subr.bf16.mxu0 %v361_v14  ;;  %313 = vmatprep.mubr.msk.bf16.mxu0 %vm362_vm1, %v361_v14  ;;  %v341_v34 = vld [vmem:[%s478_s5 + $0x38] sm:$0xff]  }
   0x2   :  { %v30_v2 = vsel %vm29_vm0, %v406_v0, 0.0  ;;  %v33_v3 = vsel %vm29_vm0, %v411_v1, 0.0  ;;  %v339_v15 = vld [vmem:[%s475_s3 + $0x8] sm:$0xff]   ;;  %317 = vmatprep.subr.bf16.mxu1 %v361_v14  ;;  %333 = vmatprep.mubr.msk.bf16.mxu1 %vm362_vm1, %v361_v14  ;;  %v340_v16 = vld [vmem:[%s475_s3] sm:$0xff]   ;;  %v342_v35 = vld [vmem:[%s478_s5 + $0x30] sm:$0xff]  }
   0x3   :  { %31 = vadd.xlane.f32.xlu0 %v30_v2  ;;  %310 = vmatpush3.bf16.msra.mxu0 %v339_v15  ;;  %v280_v25 = vld [vmem:[%s476_s1] ss:$0 sm:$0xff]  ;;  %v343_v36 = vld [vmem:[%s478_s5 + $0x28] sm:$0xff]   ;;  %v345_v38 = vld [vmem:[%s478_s5 + $0x18] sm:$0xff]  }
   0x4   :  { %311 = vmatprep.subr.bf16.mxu0 %v361_v14  ;;  %v281_v29 = vld [vmem:[%s477_s2] ss:$0 sm:$0xff]  ;;  %318 = vmatpush3.bf16.msra.mxu1 %v341_v34  ;;  %v346_v39 = vld [vmem:[%s478_s5 + $0x10] sm:$0xff]   ;;  %v347_v40 = vld [vmem:[%s478_s5 + $0x8] sm:$0xff]  }
   0x5   :  { %319 = vmatprep.subr.bf16.mxu1 %v361_v14  ;;  %v344_v37 = vld [vmem:[%s478_s5 + $0x20] sm:$0xff]  }
   0x6   :  { %v348_v41 = vld [vmem:[%s478_s5] sm:$0xff]  }
   0x7   :  { %34 = vadd.xlane.f32.xlu0 %v33_v3  ;;  %312 = vmatpush3.bf16.msra.mxu0 %v340_v16  ;;  %v282_v42 = vld [vmem:[%s479_s4] ss:$0 sm:$0xff] }
   0x8   :  { %320 = vmatpush3.bf16.msra.mxu1 %v342_v35  ;;  %v288_v62 = vld [vmem:[%s480_s6] ss:$0 sm:$0xff] }
   0x9   :  { %321 = vmatprep.subr.bf16.mxu1 %v361_v14 }
   0xc   :  { %322 = vmatpush3.bf16.msra.mxu1 %v343_v36 }
   0xd   :  { %323 = vmatprep.subr.bf16.mxu1 %v361_v14 }
  0x10   :  { %324 = vmatpush3.bf16.msra.mxu1 %v344_v37 }
  0x11   :  { %325 = vmatprep.subr.bf16.mxu1 %v361_v14 }
  0x14   :  { %326 = vmatpush3.bf16.msra.mxu1 %v345_v38 }
  0x15   :  { %327 = vmatprep.subr.bf16.mxu1 %v361_v14 }
  0x18   :  { %328 = vmatpush3.bf16.msra.mxu1 %v346_v39 }
  0x19   :  { %329 = vmatprep.subr.bf16.mxu1 %v361_v14 }
  0x1c   :  { %330 = vmatpush3.bf16.msra.mxu1 %v347_v40 }
  0x1d   :  { %331 = vmatprep.subr.bf16.mxu1 %v361_v14 }
  0x20   :  { %332 = vmatpush3.bf16.msra.mxu1 %v348_v41 }
  0x8c   :  { %v32_v4 = vpop.xlane.xlu0 %31 }
  0x8d   :  { %v37_v5 = vmul.f32 0.03125, %v32_v4 }
  0x8f   :  { %v39_v6 = vsub.f32 %v406_v0, %v37_v5 }
  0x90   :  { %v35_v7 = vpop.xlane.xlu0 %34 }
  0x91   :  { %v38_v8 = vmul.f32 0.03125, %v35_v7  ;;  %v41_v9 = vmul.f32 %v39_v6, %v39_v6 }
  0x93   :  { %v40_v10 = vsub.f32 %v411_v1, %v38_v8  ;;  %v43_v11 = vsel %vm29_vm0, %v41_v9, 0.0 }
  0x94   :  { %44 = vadd.xlane.f32.xlu1 %v43_v11 }
  0x95   :  { %v42_v12 = vmul.f32 %v40_v10, %v40_v10 }
  0x97   :  { %v46_v13 = vsel %vm29_vm0, %v42_v12, 0.0 }
  0x98   :  { %47 = vadd.xlane.f32.xlu1 %v46_v13 }
 0x11d   :  { %v45_v17 = vpop.xlane.xlu1 %44 }
 0x11e   :  { %v49_v18 = vmul.f32 0.03125, %v45_v17 }
 0x120   :  { %v51_v19 = vadd.f32 1e-05, %v49_v18 }
 0x121   :  { %v48_v20 = vpop.xlane.xlu1 %47 }
 0x122   :  { %349 = vrsqrt.f32 %v51_v19  ;;  %v50_v21 = vmul.f32 0.03125, %v48_v20 }
 0x124   :  { %v52_v22 = vadd.f32 1e-05, %v50_v21 }
 0x126   :  { %351 = vrsqrt.f32 %v52_v22 }
 0x12f   :  { %v350_v23 = vpop.eup %349 }
 0x130   :  { %v55_v24 = vmul.f32 %v350_v23, %v39_v6 }
 0x132   :  { %v64_v28 = vmul.f32 %v280_v25, %v55_v24 }
 0x133   :  { %v352_v26 = vpop.eup %351 }
 0x134   :  { %v56_v27 = vmul.f32 %v352_v26, %v40_v10  ;;  %v73_v31 = vadd.f32 %v281_v29, %v64_v28 }
 0x136   :  { %v65_v30 = vmul.f32 %v280_v25, %v56_v27 }
 0x138   :  { %v74_v32 = vadd.f32 %v281_v29, %v65_v30 }
 0x13a   :  { %v75_v33 = vpack.c.bf16 %v74_v32, %v73_v31 }
 0x13c   :  { %314 = vmatmul.mubr.msk.bf16.vlgmr.msra.gmra.mxu0 %vm29_vm0, %v75_v33 }
 0x1fc   :  { %v136_v43 = vpop.f32.mrf.mxu0 }
 0x1fd   :  { %v137_v44 = vadd.f32 %v282_v42, %v136_v43 }
 0x1fe   :  { %v315_v45 = vpop.f32.mrf.mxu0 }
 0x1ff   :  { %v286_v46 = vmul.f32 -1.702, %v137_v44 }
 0x200   :  { %v139_v47 = vpop.f32.mrf.mxu0 }
 0x201   :  { %v147_v48 = vmul.f32 1.442695, %v286_v46  ;;  %v140_v49 = vadd.f32 %v282_v42, %v139_v47 }
 0x202   :  { %v316_v50 = vpop.f32.mrf.mxu0 }
 0x203   :  { %353 = vpow2.f32 %v147_v48  ;;  %v287_v51 = vmul.f32 -1.702, %v140_v49 }
 0x205   :  { %v149_v52 = vmul.f32 1.442695, %v287_v51 }
 0x207   :  { %355 = vpow2.f32 %v149_v52 }
 0x210   :  { %v354_v53 = vpop.eup %353 }
 0x211   :  { %v151_v54 = vadd.f32 1.0, %v354_v53 }
 0x213   :  { %357 = vrcp.f32 %v151_v54 }
 0x214   :  { %v356_v55 = vpop.eup %355 }
 0x215   :  { %v152_v56 = vadd.f32 1.0, %v356_v55 }
 0x217   :  { %359 = vrcp.f32 %v152_v56 }
 0x220   :  { %v358_v57 = vpop.eup %357 }
 0x221   :  { %v157_v59 = vmul.f32 %v358_v57, %v137_v44 }
 0x224   :  { %v360_v58 = vpop.eup %359 }
 0x225   :  { %v158_v60 = vmul.f32 %v360_v58, %v140_v49 }
 0x227   :  { %v159_v61 = vpack.c.bf16 %v158_v60, %v157_v59 }
 0x229   :  { %334 = vmatmul.mubr.bf16.vlgmr.msra.gmra.mxu1 %v159_v61 }
 0x2e9   :  { %v265_v63 = vpop.f32.mrf.mxu1 }
 0x2ea   :  { %v266_v2 = vadd.f32 %v288_v62, %v265_v63 }
 0x2eb   :  { %v335_v3 = vpop.f32.mrf.mxu1 }
 0x2ec   :  { %v272_v4 = vadd.f32 %v266_v2, %v406_v0 }
 0x2ed   :  { %v268_v5 = vpop.f32.mrf.mxu1 }
 0x2ee   :  { %274 = vst.msk [vmem:[%s481_s7] sm:$0xff] %vm29_vm0, %v272_v4  ;;  %v269_v6 = vadd.f32 %v288_v62, %v268_v5 }
 0x2ef   :  { %v336_v7 = vpop.f32.mrf.mxu1 }
 0x2f0   :  { %v273_v8 = vadd.f32 %v269_v6, %v411_v1 }
 0x2f2   :  { %275 = vst.msk [vmem:[%s481_s7 + $0x8] sm:$0xff] %vm29_vm0, %v273_v8 }

// kernel: text_encoder_forward.5
= control target key start
LH: loop header
LB: loop body
LE: loop exit
PB: predicated region body
PF: predicated region fallthrough
CT: control target
= control target key end

     0   :  { %s1213_s27 = smov 0   ;;  %s1346_s0 = inlined_call_operand.vmem [shape: f32[2,8,32], index: 0, kind: input, shape index: {}, may-alias: {0,8}]   ;;  %s1347_s1 = inlined_call_operand.vmem [shape: f32[1,32], index: 1, kind: input, shape index: {}]   ;;  %s1348_s2 = inlined_call_operand.vmem [shape: f32[1,32], index: 2, kind: input, shape index: {}]   ;;  %s1349_s3 = inlined_call_operand.vmem [shape: bf16[32,96], index: 3, kind: input, shape index: {}]   ;;  %s1350_s4 = inlined_call_operand.vmem [shape: f32[1,96], index: 4, kind: input, shape index: {}]   ;;  %s1351_s5 = inlined_call_operand.vmem [shape: bf16[32,32], index: 5, kind: input, shape index: {}]   ;;  %s1352_s6 = inlined_call_operand.vmem [shape: f32[1,32], index: 6, kind: input, shape index: {}]   ;;  %s1353_s7 = inlined_call_operand.vmem [shape: f32[8,8], index: 7, kind: input, shape index: {}]   ;;  %s1354_s8 = inlined_call_operand.vmem [shape: f32[2,8,32], index: 8, kind: output, shape index: {}, may-alias: {0,8}]  }
   0x1 LB: > { %s985_s28 = sadd.s32 4294967295, %s1150_s27   ;;  %p989_p0 = scmp.ge.s32.totalorder %s1150_s27, 1  ;;  %s1150_s27 = sphi %s1213_s27, %s18_s27  }
   0x2   : > { %p261_p1 = scmp.lt.s32.totalorder %s1150_s27, 3 }
   0x4   : > { %p262_p2 = pnand %p989_p0, %p261_p1 }
   0x5   : > { %p293_p3 = scmp.lt.s32.totalorder (!%p262_p2), %s985_s28, 1  ;;  %s1154_s21 = smov (!%p262_p2), 120  }
   0x6   : > { %265 = sbr.rel (%p262_p2) target bundleno = 1733 (0x6c5), region = 52  ;;  %s1155_s22 = smov (!%p262_p2), 96  }
   0x7   : > { %s1156_s23 = smov (!%p262_p2), 88   ;;  %s1157_s24 = smov (!%p262_p2), 80  }
   0x8   : > { %s1158_s25 = smov (!%p262_p2), 112   ;;  %s1159_s26 = smov (!%p262_p2), 72  }
   0x9   : > { %s1160_s30 = smov (!%p262_p2), 104   ;;  %s1161_s11 = smov (!%p262_p2), 64  }
   0xa   : > { %s1162_s12 = smov (!%p262_p2), 56   ;;  %s1163_s13 = smov (!%p262_p2), 48  }
   0xb   : > { %s1356_s28 = smov (!%p293_p3, %s985_s28), 1  ;;  %vm303_vm0 = vcmask 261120   ;;  %v1122_v7 = vld [vmem:[%s1349_s3 + $0x8] sm:$0xff]   ;;  %v1152_v8 = vmov 0.0   ;;  %vm1153_vm1 = vmmov 0   ;;  %v1123_v9 = vld [vmem:[%s1349_s3] sm:$0xff]  }
   0xc   : > { %s990_s29 = sshll.u32 %s1356_s28, 3  ;;  %1034 = vmatprep.subr.bf16.mxu0 %v1152_v8  ;;  %1038 = vmatprep.mubr.msk.bf16.mxu0 %vm1153_vm1, %v1152_v8  ;;  %v992_v14 = vld [vmem:[%s1347_s1] ss:$0 sm:$0xff]  ;;  %vm406_vm2 = vcmask 64512   ;;  %s1164_s14 = smov 40   ;;  %vm470_vm3 = vcmask 1043456  }
   0xd   : > { %s296_s10 = scalar_lea.vmem %s1346_s0, %s990_s29  ;;  %1035 = vmatpush3.bf16.msra.mxu0 %v1122_v7  ;;  %1042 = vmatprep.subr.bf16.mxu1 %v1152_v8  ;;  %v993_v16 = vld [vmem:[%s1348_s2] ss:$0 sm:$0xff]  ;;  %s1165_s15 = smov 8   ;;  %vm857_vm4 = vcmask 130048   ;;  %vm859_vm5 = vcmask 195584  }
   0xe   : > { %v1229_v0 = vld [vmem:[%s296_s10] sm:$0xff]  ;;  %1036 = vmatprep.subr.bf16.mxu0 %v1152_v8  ;;  %1044 = vmatprep.mubr.msk.bf16.mxu1 %vm1153_vm1, %v1152_v8  ;;  %s1166_s20 = smov 16  }
   0xf   : > { %v304_v1 = vsel %vm303_vm0, %v1229_v0, 0.0  ;;  %v994_v20 = vld [vmem:[%s1350_s4] ss:$0 sm:$0xff] }
  0x10   : > { %305 = vadd.xlane.f32.xlu0 %v304_v1  ;;  %v402_v38 = vld [vmem:[%s1353_s7] sm:$0xff] }
  0x11   : > { %1037 = vmatpush3.bf16.msra.mxu0 %v1123_v9 }
  0x12   : > { %1048 = vmatprep.subr.bf16.mxu0 %v1152_v8 }
  0x99   : > { %v306_v2 = vpop.xlane.xlu0 %305 }
  0x9a   : > { %v308_v3 = vmul.f32 0.03125, %v306_v2 }
  0x9c   : > { %v309_v4 = vsub.f32 %v1229_v0, %v308_v3 }
  0x9e   : > { %v310_v5 = vmul.f32 %v309_v4, %v309_v4 }
  0xa0   : > { %v311_v6 = vsel %vm303_vm0, %v310_v5, 0.0 }
  0xa1   : > { %312 = vadd.xlane.f32.xlu0 %v311_v6 }
 0x12a   : > { %v313_v10 = vpop.xlane.xlu0 %312 }
 0x12b   : > { %v314_v11 = vmul.f32 0.03125, %v313_v10 }
 0x12d   : > { %v315_v12 = vadd.f32 1e-05, %v314_v11 }
 0x12f   : > { %1126 = vrsqrt.f32 %v315_v12 }
 0x13c   : > { %v1127_v13 = vpop.eup %1126 }
 0x13d   : > { %v317_v15 = vmul.f32 %v1127_v13, %v309_v4 }
 0x13f   : > { %v325_v17 = vmul.f32 %v992_v14, %v317_v15 }
 0x141   : > { %v333_v18 = vadd.f32 %v993_v16, %v325_v17 }
 0x143   : > { %v334_v19 = vpack.c.bf16 %v333_v18, %v333_v18 }
 0x145   : > { %1039 = vmatmul.mubr.msk.bf16.vlgmr.msra.gmra.mxu0 %vm303_vm0, %v334_v19 }
 0x146   : > { %1050 = vmatprep.mubr.msk.bf16.mxu0 %vm1153_vm1, %v1152_v8 }
 0x205   : > { %v395_v21 = vpop.f32.mrf.mxu0 }
 0x206   : > { %v396_v22 = vadd.f32 %v994_v20, %v395_v21 }
 0x207   : > { %v1040_v23 = vpop.f32.mrf.mxu0 }
 0x208   : > { %v1261_v24 = vpack.c.bf16 %v396_v22, %v396_v22 }
 0x209   : > { %v398_v25 = vpop.f32.mrf.mxu0 }
 0x20a   : > { %514 = vrot.lane.b32.xlu0 %v1261_v24, %s1154_s21  ;;  %404 = vrot.lane.b32.xlu1 %v1261_v24, %s1155_s22  ;;  %s1167_s21 = smov 24  }
 0x20b   : > { %v1041_v26 = vpop.f32.mrf.mxu0 }
 0x20e   : > { %516 = vrot.lane.b32.xlu1 %v1261_v24, %s1156_s23 }
 0x212   : > { %626 = vrot.lane.b32.xlu1 %v1261_v24, %s1157_s24 }
 0x216   : > { %624 = vrot.lane.b32.xlu1 %v1261_v24, %s1158_s25 }
 0x21a   : > { %736 = vrot.lane.b32.xlu1 %v1261_v24, %s1159_s26  ;;  %s300_s26 = scalar_lea.vmem %s1354_s8, %s990_s29 }
 0x21e   : > { %734 = vrot.lane.b32.xlu1 %v1261_v24, %s1160_s30 }
 0x27c   : > { %v405_v27 = vpop.permute.xlu1 %404  ;;  %v515_v32 = vpop.permute.xlu0 %514 }
 0x27d   : > { %v411_v28 = vsel %vm406_vm2, %v405_v27, 0 }
 0x27e   : > { %1043 = vmatpush3.bf16.xpose.msra.mxu1 %v411_v28 }
 0x27f   : > { %1054 = vmatprep.subr.bf16.mxu1 %v1152_v8 }
 0x280   : > { %v517_v29 = vpop.permute.xlu1 %516 }
 0x281   : > { %v522_v30 = vsel %vm406_vm2, %v517_v29, 0 }
 0x284   : > { %v627_v31 = vpop.permute.xlu1 %626 }
 0x285   : > { %1045 = vmatmul.mubr.msk.bf16.vlgmr.msra.gmra.mxu1 %vm406_vm2, %v1261_v24  ;;  %v632_v34 = vsel %vm406_vm2, %v627_v31, 0 }
 0x286   : > { %1055 = vmatpush3.bf16.xpose.msra.mxu1 %v522_v30  ;;  %1056 = vmatprep.mubr.msk.bf16.mxu1 %vm1153_vm1, %v1152_v8 }
 0x287   : > { %1066 = vmatprep.subr.bf16.mxu1 %v1152_v8 }
 0x288   : > { %v625_v33 = vpop.permute.xlu1 %624 }
 0x28c   : > { %v737_v35 = vpop.permute.xlu1 %736 }
 0x28d   : > { %1057 = vmatmul.mubr.msk.bf16.vlgmr.msra.gmra.mxu1 %vm406_vm2, %v515_v32  ;;  %v742_v36 = vsel %vm406_vm2, %v737_v35, 0 }
 0x28e   : > { %1067 = vmatpush3.bf16.xpose.msra.mxu1 %v632_v34  ;;  %1068 = vmatprep.mubr.msk.bf16.mxu1 %vm1153_vm1, %v1152_v8 }
 0x28f   : > { %1078 = vmatprep.subr.bf16.mxu1 %v1152_v8 }
 0x290   : > { %v735_v37 = vpop.permute.xlu1 %734 }
 0x295   : > { %1069 = vmatmul.mubr.msk.bf16.vlgmr.msra.gmra.mxu1 %vm406_vm2, %v625_v33 }
 0x296   : > { %1079 = vmatpush3.bf16.xpose.msra.mxu1 %v742_v36  ;;  %1080 = vmatprep.mubr.msk.bf16.mxu1 %vm1153_vm1, %v1152_v8 }
 0x297   : > { %1090 = vmatprep.subr.bf16.mxu1 %v1152_v8 }
 0x29d   : > { %1081 = vmatmul.mubr.msk.bf16.vlgmr.msra.gmra.mxu1 %vm406_vm2, %v735_v37 }
 0x29e   : > { %1094 = vmatprep.mubr.msk.bf16.mxu1 %vm1153_vm1, %v1152_v8 }
 0x345   : > { %v447_v39 = vpop.f32.mrf.mxu1 }
 0x346   : > { %v448_v40 = vadd.f32 %v447_v39, %v402_v38 }
 0x347   : > { %v1046_v41 = vpop.f32.mrf.mxu1 }
 0x348   : > { %v453_v42 = vsel %vm406_vm2, %v448_v40, -inf }
 0x349   : > { %454 = vmax.xlane.f32.xlu1 %v453_v42  ;;  %v450_v43 = vpop.f32.mrf.mxu1 }
 0x34b   : > { %v1047_v44 = vpop.f32.mrf.mxu1 }
 0x34d   : > { %v558_v45 = vpop.f32.mrf.mxu1 }
 0x34e   : > { %v559_v46 = vadd.f32 %v558_v45, %v402_v38 }
 0x34f   : > { %v1058_v47 = vpop.f32.mrf.mxu1 }
 0x350   : > { %v564_v48 = vsel %vm406_vm2, %v559_v46, -inf }
 0x351   : > { %565 = vmax.xlane.f32.xlu0 %v564_v48  ;;  %v561_v49 = vpop.f32.mrf.mxu1 }
 0x353   : > { %v1059_v50 = vpop.f32.mrf.mxu1 }
 0x355   : > { %v668_v51 = vpop.f32.mrf.mxu1 }
 0x356   : > { %v669_v52 = vadd.f32 %v668_v51, %v402_v38 }
 0x357   : > { %v1070_v53 = vpop.f32.mrf.mxu1 }
 0x358   : > { %v674_v54 = vsel %vm406_vm2, %v669_v52, -inf  ;;  %v1124_v53 = vld [vmem:[%s1351_s5 + $0x8] sm:$0xff]  }
 0x359   : > { %675 = vmax.xlane.f32.xlu1 %v674_v54  ;;  %v671_v55 = vpop.f32.mrf.mxu1  ;;  %1091 = vmatpush3.bf16.msra.mxu1 %v1124_v53  ;;  %v1125_v54 = vld [vmem:[%s1351_s5] sm:$0xff]  }
 0x35a   : > { %1092 = vmatprep.subr.bf16.mxu1 %v1152_v8 }
 0x35b   : > { %v1071_v56 = vpop.f32.mrf.mxu1 }
 0x35d   : > { %v778_v57 = vpop.f32.mrf.mxu1  ;;  %1093 = vmatpush3.bf16.msra.mxu1 %v1125_v54 }
 0x35e   : > { %v779_v58 = vadd.f32 %v778_v57, %v402_v38 }
 0x35f   : > { %v1082_v59 = vpop.f32.mrf.mxu1 }
 0x360   : > { %v784_v60 = vsel %vm406_vm2, %v779_v58, -inf }
 0x361   : > { %785 = vmax.xlane.f32.xlu0 %v784_v60  ;;  %v781_v61 = vpop.f32.mrf.mxu1 }
 0x363   : > { %v1083_v62 = vpop.f32.mrf.mxu1 }
 0x3d2   : > { %v455_v63 = vpop.xlane.xlu1 %454 }
 0x3d3   : > { %v456_v1 = vsub.f32 %v448_v40, %v455_v63 }
 0x3d5   : > { %v457_v2 = vmul.f32 1.442695, %v456_v1 }
 0x3d7   : > { %1128 = vpow2.f32 %v457_v2 }
 0x3da   : > { %v566_v3 = vpop.xlane.xlu0 %565 }
 0x3db   : > { %v567_v4 = vsub.f32 %v559_v46, %v566_v3 }
 0x3dd   : > { %v568_v5 = vmul.f32 1.442695, %v567_v4 }
 0x3df   : > { %1130 = vpow2.f32 %v568_v5 }
 0x3e2   : > { %v676_v16 = vpop.xlane.xlu1 %675 }
 0x3e3   : > { %v677_v17 = vsub.f32 %v669_v52, %v676_v16 }
 0x3e4   : > { %v1129_v6 = vpop.eup %1128 }
 0x3e5   : > { %v459_v7 = vsel %vm406_vm2, %v1129_v6, 0.0  ;;  %v678_v18 = vmul.f32 1.442695, %v677_v17 }
 0x3e6   : > { %460 = vadd.xlane.f32.xlu1 %v459_v7  ;;  %v1006_v7 = vld [vmem:[%s1352_s6] ss:$0 sm:$0xff] }
 0x3ea   : > { %v786_v9 = vpop.xlane.xlu0 %785 }
 0x3eb   : > { %v787_v10 = vsub.f32 %v779_v58, %v786_v9 }
 0x3ec   : > { %v1131_v11 = vpop.eup %1130 }
 0x3ed   : > { %v788_v12 = vmul.f32 1.442695, %v787_v10  ;;  %v570_v13 = vsel %vm406_vm2, %v1131_v11, 0.0 }
 0x3ee   : > { %571 = vadd.xlane.f32.xlu0 %v570_v13 }
 0x3ef   : > { %1132 = vpow2.f32 %v788_v12 }
 0x3f0   : > { %1134 = vpow2.f32 %v678_v18 }
 0x3f7   : > { %465 = vrot.lane.b32.xlu1 %v1261_v24, %s1161_s11 }
 0x3fc   : > { %v1133_v14 = vpop.eup %1132 }
 0x3fd   : > { %v790_v15 = vsel %vm406_vm2, %v1133_v14, 0.0  ;;  %v1135_v19 = vpop.eup %1134 }
 0x3fe   : > { %791 = vadd.xlane.f32.xlu0 %v790_v15  ;;  %v680_v20 = vsel %vm406_vm2, %v1135_v19, 0.0 }
 0x414   : > { %576 = vrot.lane.b32.xlu0 %v1261_v24, %s1162_s12 }
 0x41b   : > { %681 = vadd.xlane.f32.xlu1 %v680_v20 }
 0x42c   : > { %686 = vrot.lane.b32.xlu1 %v1261_v24, %s1163_s13 }
 0x430   : > { %796 = vrot.lane.b32.xlu1 %v1261_v24, %s1164_s14 }
 0x46f   : > { %v461_v21 = vpop.xlane.xlu1 %460 }
 0x470   : > { %1136 = vrcp.f32 %v461_v21 }
 0x473   : > { %v466_v22 = vpop.permute.xlu1 %465 }
 0x474   : > { %v472_v23 = vsel %vm470_vm3, %v466_v22, 0 }
 0x475   : > { %1049 = vmatpush3.bf16.msra.mxu0 %v472_v23 }
 0x476   : > { %1060 = vmatprep.subr.bf16.mxu0 %v1152_v8 }
 0x477   : > { %v572_v25 = vpop.xlane.xlu0 %571 }
 0x478   : > { %1138 = vrcp.f32 %v572_v25 }
 0x47d   : > { %v1137_v26 = vpop.eup %1136 }
 0x47e   : > { %v463_v27 = vmul.f32 %v1137_v26, %v1129_v6 }
 0x480   : > { %v464_v28 = vpack.c.bf16 %v463_v27, %v463_v27 }
 0x482   : > { %1051 = vmatmul.mubr.msk.bf16.vlgmr.msra.gmra.mxu0 %vm406_vm2, %v464_v28 }
 0x483   : > { %1062 = vmatprep.mubr.msk.bf16.mxu0 %vm1153_vm1, %v1152_v8 }
 0x485   : > { %v1139_v24 = vpop.eup %1138 }
 0x486   : > { %v574_v30 = vmul.f32 %v1139_v24, %v1131_v11 }
 0x487   : > { %v792_v29 = vpop.xlane.xlu0 %791 }
 0x488   : > { %v575_v33 = vpack.c.bf16 %v574_v30, %v574_v30 }
 0x48b   : > { %v577_v31 = vpop.permute.xlu0 %576 }
 0x48c   : > { %v582_v32 = vsel %vm470_vm3, %v577_v31, 0 }
 0x48d   : > { %1061 = vmatpush3.bf16.msra.mxu0 %v582_v32 }
 0x48e   : > { %1072 = vmatprep.subr.bf16.mxu0 %v1152_v8 }
 0x490   : > { %1063 = vmatmul.mubr.msk.bf16.vlgmr.msra.gmra.mxu0 %vm406_vm2, %v575_v33 }
 0x491   : > { %1074 = vmatprep.mubr.msk.bf16.mxu0 %vm1153_vm1, %v1152_v8 }
 0x4a4   : > { %v682_v34 = vpop.xlane.xlu1 %681 }
 0x4a5   : > { %1140 = vrcp.f32 %v682_v34 }
 0x4a6   : > { %1142 = vrcp.f32 %v792_v29 }
 0x4a8   : > { %v687_v35 = vpop.permute.xlu1 %686 }
 0x4a9   : > { %v692_v36 = vsel %vm470_vm3, %v687_v35, 0 }
 0x4aa   : > { %1073 = vmatpush3.bf16.msra.mxu0 %v692_v36 }
 0x4ab   : > { %1084 = vmatprep.subr.bf16.mxu0 %v1152_v8 }
 0x4ac   : > { %v797_v39 = vpop.permute.xlu1 %796 }
 0x4ad   : > { %v802_v42 = vsel %vm470_vm3, %v797_v39, 0 }
 0x4b2   : > { %v1141_v37 = vpop.eup %1140 }
 0x4b3   : > { %v684_v38 = vmul.f32 %v1141_v37, %v1135_v19  ;;  %v1143_v41 = vpop.eup %1142 }
 0x4b4   : > { %v794_v43 = vmul.f32 %v1143_v41, %v1133_v14 }
 0x4b5   : > { %v685_v40 = vpack.c.bf16 %v684_v38, %v684_v38 }
 0x4b6   : > { %v795_v44 = vpack.c.bf16 %v794_v43, %v794_v43 }
 0x4b7   : > { %1075 = vmatmul.mubr.msk.bf16.vlgmr.msra.gmra.mxu0 %vm406_vm2, %v685_v40 }
 0x4b8   : > { %1085 = vmatpush3.bf16.msra.mxu0 %v802_v42  ;;  %1086 = vmatprep.mubr.msk.bf16.mxu0 %vm1153_vm1, %v1152_v8 }
 0x4bf   : > { %1087 = vmatmul.mubr.msk.bf16.vlgmr.msra.gmra.mxu0 %vm406_vm2, %v795_v44 }
 0x542   : > { %v508_v45 = vpop.f32.mrf.mxu0 }
 0x544   : > { %v1052_v46 = vpop.f32.mrf.mxu0 }
 0x546   : > { %v511_v47 = vpop.f32.mrf.mxu0 }
 0x548   : > { %v1053_v48 = vpop.f32.mrf.mxu0 }
 0x550   : > { %v618_v49 = vpop.f32.mrf.mxu0 }
 0x551   : > { %845 = vrot.lane.b32.xlu0 %v618_v49, %s1165_s15 }
 0x552   : > { %v1064_v50 = vpop.f32.mrf.mxu0 }
 0x554   : > { %v621_v51 = vpop.f32.mrf.mxu0 }
 0x556   : > { %v1065_v52 = vpop.f32.mrf.mxu0 }
 0x577   : > { %v728_v55 = vpop.f32.mrf.mxu0 }
 0x578   : > { %849 = vrot.lane.b32.xlu1 %v728_v55, %s1166_s20 }
 0x579   : > { %v1076_v56 = vpop.f32.mrf.mxu0 }
 0x57b   : > { %v731_v57 = vpop.f32.mrf.mxu0 }
 0x57d   : > { %v1077_v58 = vpop.f32.mrf.mxu0 }
 0x57f   : > { %v838_v59 = vpop.f32.mrf.mxu0 }
 0x580   : > { %853 = vrot.lane.b32.xlu0 %v838_v59, %s1167_s21 }
 0x581   : > { %v1088_v60 = vpop.f32.mrf.mxu0 }
 0x583   : > { %v841_v61 = vpop.f32.mrf.mxu0 }
 0x585   : > { %v1089_v62 = vpop.f32.mrf.mxu0 }
 0x5c3   : > { %v846_v63 = vpop.permute.xlu0 %845 }
 0x5c4   : > { %v856_v2 = vsel %vm406_vm2, %v508_v45, %v846_v63 }
 0x5ea   : > { %v850_v1 = vpop.permute.xlu1 %849 }
 0x5eb   : > { %v858_v8 = vsel %vm857_vm4, %v856_v2, %v850_v1 }
 0x5f2   : > { %v854_v3 = vpop.permute.xlu0 %853 }
 0x5f3   : > { %v860_v4 = vsel %vm859_vm5, %v858_v8, %v854_v3 }
 0x5f4   : > { %861 = vst.msk [vmem:[#allocation2] sm:$0xff] %vm303_vm0, %v860_v4 }
 0x5fb   : > { %v862_v5 = vld [vmem:[#allocation2] sm:$0xff] }
 0x5fc   : > { %v863_v6 = vpack.c.bf16 %v862_v5, %v862_v5 }
 0x5fe   : > { %1095 = vmatmul.mubr.msk.bf16.vlgmr.msra.gmra.mxu1 %vm303_vm0, %v863_v6 }
 0x6be   : > { %v924_v9 = vpop.f32.mrf.mxu1 }
 0x6bf   : > { %v925_v10 = vadd.f32 %v1006_v7, %v924_v9 }
 0x6c0   : > { %v1096_v11 = vpop.f32.mrf.mxu1 }
 0x6c1   : > { %v930_v12 = vadd.f32 %v925_v10, %v1229_v0 }
 0x6c2   : > { %v927_v13 = vpop.f32.mrf.mxu1 }
 0x6c3   : > { %931 = vst.msk [vmem:[%s300_s26] sm:$0xff] %vm303_vm0, %v930_v12 }
 0x6c4   : > { %v1097_v14 = vpop.f32.mrf.mxu1 }
 0x6c5 PF: > { %s18_s27 = sadd.s32 1, %s1150_s27  }
 0x6c6   : > { %p15_p4 = scmp.ge.s32.totalorder %s18_s27, 4  }
 0x6c8   :  { %17 = sbr.rel (!%p15_p4) target bundleno = 1 (0x1), region = 82 }

</bundles_post_ra>
